<compile_context>
chip_gen: v7x
topology: tpu7x:2x2x1
jax: 0.10.0
libtpu: 0.0.40
codegen_flags: <defaults>
</compile_context>

<pallas_src>
import jax
import jax.numpy as jnp
from jax import lax
from jax.experimental import pallas as pl
from jax.experimental.pallas import tpu as pltpu

_VMEM_LIMIT_BYTES = 32 * 1024 * 1024   # safe scoped limit on v5e/v6e/v7x
_VMEM_HEADROOM = 0.75                  # ~25% headroom for pipeline internals


def _gram_kernel(x_ref, o_ref):
    """One batch tile: o[b, j, p] = sum_k x[b, j, k] * x[b, p, k].

    x_ref: (bt, N, D)   o_ref: (bt, N, N)
    """
    x = x_ref[...]                      # single shared VMEM load, used as LHS & RHS
    g = lax.dot_general(
        x, x,
        dimension_numbers=(((2,), (2,)), ((0,), (0,))),   # contract last dims, batch dim 0
        precision=lax.Precision.HIGHEST,                  # true f32 operand precision
        preferred_element_type=jnp.float32,
    )                                    # (bt, N, N)
    o_ref[...] = g.astype(o_ref.dtype)


def _auto_batch_tile(B: int, N: int, D: int, itemsize: int, budget_bytes: int) -> int:
    """Largest batch tile whose double-buffered in+out blocks fit the budget,
    while keeping >= 2 grid steps so v7x can shard the batch across its 2 TCs."""
    per_batch = 2 * itemsize * (N * D + N * N)     # double-buffered input + output
    bt = max(1, budget_bytes // max(1, per_batch))
    if B >= 2:
        bt = min(bt, B // 2)                       # keep grid length >= 2 (megacore)
    return max(1, min(bt, B))


def embed2graph_by_product(x, *, batch_tile: int | None = None,
                           vmem_limit_bytes: int = _VMEM_LIMIT_BYTES):
    """x: (B, N, D) -> (B, N, N, 1), matching Embed2GraphByProduct.forward."""
    B, N, D = x.shape
    itemsize = jnp.dtype(x.dtype).itemsize

    if batch_tile is None:
        batch_tile = _auto_batch_tile(
            B, N, D, itemsize, int(vmem_limit_bytes * _VMEM_HEADROOM))
    bt = max(1, min(batch_tile, B))
    grid = (pl.cdiv(B, bt),)   # non-divisible B handled: padded tail outputs are dropped

    out = pl.pallas_call(
        _gram_kernel,
        out_shape=jax.ShapeDtypeStruct((B, N, N), x.dtype),
        grid_spec=pltpu.PrefetchScalarGridSpec(
            num_scalar_prefetch=0,
            grid=grid,
            # Block last-two dims equal the full array dims -> legal without
            # (8,128) padding; no wrapper pad / post-kernel slice needed.
            in_specs=[pl.BlockSpec((bt, N, D), lambda b: (b, 0, 0))],
            out_specs=pl.BlockSpec((bt, N, N), lambda b: (b, 0, 0)),
        ),
        compiler_params=pltpu.CompilerParams(
            dimension_semantics=("parallel",),       # batch axis -> megacore on v7x
            vmem_limit_bytes=vmem_limit_bytes,
        ),
        cost_estimate=pl.CostEstimate(
            flops=2 * B * N * N * D,
            bytes_accessed=(B * N * D + B * N * N) * itemsize,
            transcendentals=0,
        ),
    )(x)

    # unsqueeze(-1): reshape only, no extra HBM pass.
    return out[..., None]


if __name__ == "__main__":
    # Small shapes consistent with the module: x is (batch, roi, feature).
    B, N, D = 2, 8, 32

    key = jax.random.PRNGKey(0)
    x = jax.random.normal(key, (B, N, D), dtype=jnp.float32)

    out = embed2graph_by_product(x)
    out = jax.block_until_ready(out)

    ref = jnp.einsum("ijk,ipk->ijp", x, x)[..., None]
    assert out.shape == (B, N, N, 1), out.shape
    assert jnp.allclose(out, ref, atol=1e-5, rtol=1e-5), float(jnp.abs(out - ref).max())

    print("KERNEL_OK")
</pallas_src>

<mosaic_0001>
module attributes {stable_mosaic.version = 11 : i64} {
  func.func @_gram_kernel(%arg0: i32, %arg1: memref<1x8x32xf32, #tpu.memory_space<vmem>>, %arg2: memref<1x8x8xf32, #tpu.memory_space<vmem>>) attributes {dimension_semantics = [#tpu.dimension_semantics<parallel>], iteration_bounds = array<i64: 2>, scalar_prefetch = 0 : i64, scratch_operands = 0 : i64, tpu.core_type = #tpu.core_type<tc>, window_params = [{transform_indices = @transform_0, window_bounds = array<i64: 1, 8, 32>}, {transform_indices = @transform_1, window_bounds = array<i64: 1, 8, 8>}]} {
    %c0 = arith.constant 0 : index
    %c0_0 = arith.constant 0 : index
    %c0_1 = arith.constant 0 : index
    %0 = vector.load %arg1[%c0, %c0_0, %c0_1] : memref<1x8x32xf32, #tpu.memory_space<vmem>>, vector<1x8x32xf32>
    %cst = arith.constant dense<0.000000e+00> : vector<1x8x8xf32>
    %1 = tpu.matmul %0, %0, %cst {dimension_numbers = #tpu.dot_dimension_numbers<[2], [2], [1], [1], [0, 0, 0, 1, 1, 1], [0], [0]>, precision = #tpu.contract_precision<fp32>} : vector<1x8x32xf32>, vector<1x8x32xf32>, vector<1x8x8xf32> -> vector<1x8x8xf32>
    %c0_2 = arith.constant 0 : index
    %c0_3 = arith.constant 0 : index
    %c0_4 = arith.constant 0 : index
    %2 = vector.load %arg2[%c0_2, %c0_3, %c0_4] : memref<1x8x8xf32, #tpu.memory_space<vmem>>, vector<1x8x8xf32>
    tpu.vector_store %arg2[%c0_2, %c0_3, %c0_4], %1 {strides = array<i32>} : memref<1x8x8xf32, #tpu.memory_space<vmem>>, vector<1x8x8xf32>,
    return
  }
  func.func @transform_0(%arg0: i32) -> (i32, i32, i32) {
    %c0_i32 = arith.constant 0 : i32
    %c0_i32_0 = arith.constant 0 : i32
    %c0_i32_1 = arith.constant 0 : i32
    return %arg0, %c0_i32, %c0_i32_0 : i32, i32, i32
  }
  func.func @transform_1(%arg0: i32) -> (i32, i32, i32) {
    %c0_i32 = arith.constant 0 : i32
    %c0_i32_0 = arith.constant 0 : i32
    %c0_i32_1 = arith.constant 0 : i32
    return %arg0, %c0_i32, %c0_i32_0 : i32, i32, i32
  }
}

</mosaic_0001>

<bundles_post_ra>
// kernel: tpu_custom_call.1
= control target key start
LH: loop header
LB: loop body
LE: loop exit
PB: predicated region body
PF: predicated region fallthrough
CT: control target
= control target key end

     0   :  { %6 = vsyncpa [#allocation3], 0  ;;  %s1063_s0 = inlined_call_operand.hbm [shape: f32[2,8,32], index: 0, kind: input, shape index: {}]   ;;  %s1064_s1 = inlined_call_operand.hbm [shape: f32[2,8,8], index: 1, kind: output, shape index: {}]  }
   0x1   :  { %8 = vsyncpa [#allocation3 + $0x1], 0 }
   0x2   :  { %9 = vsyncpa [#allocation4], 0 }
   0x3   :  { %11 = vsyncpa [#allocation4 + $0x1], 0  ;;  %s892_s6 = smov 0   ;;  %s894_s7 = smov 0  }
   0x4   :  { %s896_s8 = smov 0   ;;  %s898_s9 = smov 0  }
   0x5 LB: > { %s913_s10 = sadd.s32 4294967295, %s876_s9   ;;  %s669_s11 = sadd.s32 4294967294, %s876_s9   ;;  %s876_s9 = sphi %s898_s9, %s1079_s9   ;;  %s872_s8 = sphi %s896_s8, %s1078_s8   ;;  %s868_s7 = sphi %s894_s7, %s1077_s7   ;;  %s864_s6 = sphi %s892_s6, %s1076_s6  }
   0x6   : > { %s917_s12 = sadd.s32 1, %s876_s9   ;;  %s24_s13 = sadd.s32 1, %s872_s8 }
   0x7   : > { %s21_s14 = ssub.s32 %s876_s9, %s917_s12  ;;  %p31_p0 = scmp.ne.s32.totalorder %s872_s8, %s868_s7 }
   0x8   : > { %p22_p1 = scmp.eq.s32.totalorder %s21_s14, 0  ;;  %p32_p2 = scmp.eq.s32.totalorder %s876_s9, 0 }
   0x9   : > { %p37_p3 = scmp.ne.s32.totalorder %s868_s7, %s864_s6  ;;  %p38_p4 = scmp.eq.s32.totalorder %s913_s10, 0 }
   0xa   : > { %s929_s15 = scalar_select %p22_p1, %s872_s8, %s24_s13  }
   0xb   : > { %p931_p5 = por %p32_p2, %p31_p0  ;;  %p935_p6 = por %p38_p4, %p37_p3 }
   0xc   : > { %p61_p7 = scmp.eq.s32.totalorder %s913_s10, 1  ;;  %p67_p8 = scmp.eq.s32.totalorder %s669_s11, 1 }
   0xd   : > { %p744_p10 = scmp.lt.s32.totalorder %s876_s9, 2  ;;  %s87_s20 = sand.u32 1, %s872_s8  }
   0xe   : > { %p942_p11 = por %p61_p7, %p31_p0  ;;  %p946_p12 = por %p67_p8, %p37_p3 }
   0xf   : > { %s673_s21 = sshll.u32 %s876_s9, 7  ;;  %s672_s22 = sshll.u32 %s87_s20, 3 }
  0x10   : > { %s1068_s18 = scalar_select %p942_p11, 1, 0 }
  0x11   : > { %s1069_s19 = scalar_select %p946_p12, 1, 0 }
  0x12   : > { %s955_s25 = scalar_lea.hbm %s1063_s0, %s673_s21  ;;  %s91_s26 = scalar_lea.vmem [#allocation2], %s672_s22 }
  0x13   : > { %s98_s27 = sshll.u32 %s91_s26, 4  ;;  %p959_p13 = pnand %p744_p10, %p931_p5  ;;  %s963_s27 = int_to_ptr.vmem [resolvable:$true] %s98_s27 }
  0x14   : > { %s88_s29 = scalar_lea.sflag [#allocation3], %s87_s20  ;;  %s780_s30 = scalar_lea.hbm %s955_s25, 128 }
  0x15   : > { %p781_p2 = scmp.ne.s32.totalorder %s955_s25, %s780_s30  ;;  %p782_p3 = pneg %p959_p13 }
  0x16   : > { %s785_s4 = scalar_lea.hbm %s1063_s0, 256  ;;  %p786_p5 = scmp.lt.u32.totalorder %s955_s25, %s1063_s0 }
  0x17   : > { %p783_p4 = pnand %p782_p3, %p781_p2  ;;  %p787_p8 = scmp.lt.u32.totalorder %s785_s4, %s780_s30 }
  0x18   : > { %p789_p9 = scmp.lt.u32.totalorder %s780_s30, %s955_s25 }
  0x19   : > { %p784_p7 = pneg %p783_p4  ;;  %p788_p10 = por %p787_p8, %p786_p5 }
  0x1b   : > { %p790_p0 = por %p789_p9, %p788_p10 }
  0x1d   : > { %p791_p1 = pnand %p790_p0, %p784_p7 }
  0x1f   : > { %794 = shalt.err (!%p791_p1)
}
  0x20   : > { %s795_s13 = scalar_lea.vmem %s963_s27, 128  ;;  %s878_s14 = smov [#allocation2]  }
  0x21   : > { %p796_p2 = scmp.ne.s32.totalorder %s963_s27, %s795_s13  ;;  %s800_s16 = sshll.u32 %s878_s14, 4  ;;  %s801_s16 = int_to_ptr.vmem [resolvable:$false] %s800_s16 }
  0x22   : > { %s802_s20 = scalar_lea.vmem %s801_s16, 256  ;;  %p803_p11 = scmp.lt.s32.totalorder %s963_s27, %s801_s16 }
  0x23   : > { %p798_p4 = pnand %p796_p2, %p782_p3  ;;  %p804_p5 = scmp.lt.s32.totalorder %s802_s20, %s795_s13 }
  0x25   : > { %p799_p12 = pneg %p798_p4  ;;  %p805_p8 = por %p804_p5, %p803_p11 }
  0x27   : > { %p806_p9 = pnand %p805_p8, %p799_p12 }
  0x29   : > { %809 = shalt.err (!%p806_p9)
}
  0x2a   : > { %739 = dma.hbm_to_vmem [thread:$0]  (!%p959_p13), %s955_s25, 128, %s963_s27, %s88_s29  }
  0x2b   : > { %p1071_p0 = scmp.lt.s32.totalorder %s876_s9, 3  ;;  %p1072_p1 = scmp.ge.s32.totalorder %s876_s9, 1 }
  0x2d   : > { %p104_p3 = pnand %p1072_p1, %p1071_p0 }
  0x2e   : > { %s997_s21 = sand.u32 (!%p104_p3), 1, %s868_s7  }
  0x2f   : > { %107 = sbr.rel (%p104_p3) target bundleno = 311 (0x137), region = 24  ;;  %s675_s22 = sshll.u32 (!%p104_p3), %s997_s21, 3 }
  0x30   : > { %s110_s23 = scalar_lea.sflag (!%p104_p3), [#allocation3], %s997_s21  ;;  %s113_s24 = scalar_lea.vmem (!%p104_p3), [#allocation2], %s675_s22 }
  0x36   : > { %855 = dma.done.wait (%p935_p6), %s110_s23, 128  }
  0x37   : > { %857 = vsyncadd (%p935_p6), %s110_s23, 4294967168  ;;  %v879_v0 = vmov 0.0   ;;  %vm880_vm0 = vmmov 0   ;;  %vm133_vm1 = vcmask 261120   ;;  %v132_v1 = vld [vmem:[%s113_s24] sm:$0xff]  ;;  %s678_s17 = sshll.u32 %s913_s10, 7 }
  0x38   : > { %708 = vmatprep.subr.mxu0 %v879_v0  ;;  %693 = vmatprep.subr.mxu1 %v879_v0  ;;  %v135_v2 = vsel %vm133_vm1, %v132_v1, 0  ;;  %s131_s25 = scalar_lea.vmem [#allocation5], %s675_s22  ;;  %vm583_vm2 = vcmask 64512   ;;  %s1019_s29 = scalar_lea.hbm %s1064_s1, %s678_s17 }
  0x39   : > { %710 = vmatprep.mubr.msk.f32.mxu0 %vm880_vm0, %v879_v0  ;;  %695 = vmatprep.mubr.msk.f32.mxu1 %vm880_vm0, %v879_v0  ;;  %v138_v3 = vand.u32 4294901760, %v135_v2  ;;  %s599_s26 = sshll.u32 %s131_s25, 4  ;;  %s586_s30 = scalar_lea.sflag [#allocation4], %s997_s21  ;;  %s1021_s26 = int_to_ptr.vmem [resolvable:$true] %s599_s26 }
  0x3a   : > { %s810_s10 = scalar_lea.vmem %s1021_s26, 128  ;;  %p1073_p11 = scmp.ne.s32.totalorder %s1068_s18, 0 }
  0x3b   : > { %709 = vmatpush3.xpose.msra.mxu0 %v138_v3  ;;  %694 = vmatpush3.xpose.msra.mxu1 %v138_v3  ;;  %v204_v4 = vsub.f32 %v135_v2, %v138_v3  ;;  %p811_p6 = scmp.ne.s32.totalorder %s1021_s26, %s810_s10  ;;  %s881_s2 = smov [#allocation5]  }
  0x3c   : > { %698 = vmatprep.subr.mxu1 %v879_v0  ;;  %713 = vmatprep.subr.mxu0 %v879_v0  ;;  %s814_s3 = sshll.u32 %s881_s2, 4  ;;  %s815_s3 = int_to_ptr.vmem [resolvable:$false] %s814_s3 }
  0x3d   : > { %v205_v5 = vand.u32 4294901760, %v204_v4  ;;  %p812_p12 = pnand %p811_p6, %p1073_p11  ;;  %s816_s4 = scalar_lea.vmem %s815_s3, 256 }
  0x3e   : > { %p817_p7 = scmp.lt.s32.totalorder %s1021_s26, %s815_s3  ;;  %p818_p10 = scmp.lt.s32.totalorder %s816_s4, %s810_s10 }
  0x3f   : > { %711 = vmatmul.mubr.f32.vlgmr.msra.gmra.mrb[0].mxu0 %v205_v5  ;;  %v206_v6 = vsub.f32 %v204_v4, %v205_v5  ;;  %p813_p13 = pneg %p812_p12 }
  0x40   : > { %714 = vmatpush3.xpose.msra.mxu0 %v205_v5  ;;  %715 = vmatprep.mubr.msk.f32.mxu0 %vm880_vm0, %v879_v0  ;;  %p819_p2 = por %p818_p10, %p817_p7 }
  0x41   : > { %v207_v7 = vand.u32 4294901760, %v206_v6  ;;  %718 = vmatprep.subr.mxu0 %v879_v0 }
  0x42   : > { %p820_p4 = pnand %p819_p2, %p813_p13 }
  0x43   : > { %696 = vmatmul.mubr.f32.vlgmr.msra.gmra.mrb[0].mxu1 %v207_v7 }
  0x44   : > { %699 = vmatpush3.xpose.msra.mxu1 %v207_v7  ;;  %700 = vmatprep.mubr.msk.f32.mxu1 %vm880_vm0, %v879_v0 }
  0x45   : > { %703 = vmatprep.subr.mxu1 %v879_v0 }
  0x47   : > { %716 = vmatmul.mubr.f32.vlgmr.msra.gmra.mrb[0].mxu0 %v138_v3 }
  0x48   : > { %719 = vmatpush3.xpose.msra.mxu0 %v138_v3  ;;  %720 = vmatprep.mubr.msk.f32.mxu0 %vm880_vm0, %v879_v0 }
  0x4b   : > { %701 = vmatmul.mubr.f32.vlgmr.msra.gmra.mrb[0].mxu1 %v138_v3 }
  0x4c   : > { %704 = vmatpush3.xpose.msra.mxu1 %v204_v4  ;;  %705 = vmatprep.mubr.msk.f32.mxu1 %vm880_vm0, %v879_v0 }
  0x4f   : > { %721 = vmatmul.mubr.f32.vlgmr.msra.gmra.mrb[0].mxu0 %v138_v3 }
  0x53   : > { %706 = vmatmul.mubr.f32.vlgmr.msra.gmra.mrb[0].mxu1 %v204_v4 }
 0x122   : > { %v579_v8 = vpop.f32.mrb[0].mxu0 }
 0x123   : > { %v722_v9 = vpop.f32.mrb[1].mxu0 }
 0x126   : > { %v359_v10 = vpop.f32.mrb[0].mxu1 }
 0x127   : > { %v723_v11 = vadd.f32 %v579_v8, %v359_v10  ;;  %v707_v12 = vpop.f32.mrb[1].mxu1 }
 0x129   : > { %584 = vst.msk [vmem:[%s131_s25] sm:$0xff] %vm583_vm2, %v723_v11 }
 0x12a   : > { %823 = shalt.err (!%p820_p4)
}
 0x12b   : > { %s824_s5 = scalar_lea.hbm %s1019_s29, 128  ;;  %s828_s14 = scalar_lea.hbm %s1064_s1, 256 }
 0x12c   : > { %p825_p5 = scmp.ne.s32.totalorder %s1019_s29, %s824_s5  ;;  %p829_p0 = scmp.lt.u32.totalorder %s1019_s29, %s1064_s1 }
 0x12d   : > { %p830_p1 = scmp.lt.u32.totalorder %s828_s14, %s824_s5  ;;  %p832_p6 = scmp.lt.u32.totalorder %s824_s5, %s1019_s29 }
 0x12e   : > { %p826_p8 = pnand %p825_p5, %p1073_p11 }
 0x12f   : > { %p831_p3 = por %p830_p1, %p829_p0 }
 0x130   : > { %p827_p9 = pneg %p826_p8 }
 0x131   : > { %p833_p12 = por %p832_p6, %p831_p3 }
 0x133   : > { %p834_p13 = pnand %p833_p12, %p827_p9 }
 0x135   : > { %837 = shalt.err (!%p834_p13)
}
 0x136   : > { %734 = dma.vmem_to_hbm [thread:$0]  (%p1073_p11), %s1021_s26, 128, %s1019_s29, %s586_s30  }
 0x137 PF: > { %s611_s21 = sand.u32 1, %s864_s6   ;;  %p1074_p7 = scmp.ne.s32.totalorder %s1069_s19, 0 }
 0x138   : > { %p1075_p10 = scmp.ge.s32.totalorder %s876_s9, 2  ;;  %s612_s22 = scalar_lea.sflag [#allocation4], %s611_s21 }
 0x13a   : > { %p741_p2 = pnand %p1075_p10, %p1074_p7 }
 0x13c   : > { %859 = dma.done.wait (!%p741_p2), %s612_s22, 128  }
 0x13d   : > { %861 = vsyncadd (!%p741_p2), %s612_s22, 4294967168  ;;  %p14_p4 = scmp.ge.s32.totalorder %s917_s12, 4   ;;  %s1076_s6 = smov %s868_s7 }
 0x13e   : > { %s1077_s7 = smov %s872_s8  ;;  %s1078_s8 = smov %s929_s15 }
 0x13f   : > { %s1079_s9 = smov %s917_s12  ;;  %16 = sbr.rel (!%p14_p4) target bundleno = 5 (0x5), region = 69 }
 0x146   :  { %617 = vsyncpa [#allocation3], 1 }
 0x147   :  { %619 = vsyncpa [#allocation3 + $0x1], 1 }
 0x148   :  { %620 = vsyncpa [#allocation4], 1 }
 0x149   :  { %622 = vsyncpa [#allocation4 + $0x1], 1 }

</bundles_post_ra>
